<compile_context>
chip_gen: v7x
topology: tpu7x:2x2x1
jax: 0.10.0
libtpu: 0.0.40
codegen_flags: <defaults>
</compile_context>

<pallas_src>
import math
from functools import partial

import jax
import jax.numpy as jnp
from jax.experimental import pallas as pl
from jax.experimental.pallas import tpu as pltpu


# ------------------------- config (mirrors `args`) -------------------------
class Cfg:
    n_agents = 3
    n_entities = 5
    obs_entity_feats = 7          # feat_dim = obs_entity_feats - 1 = 6, last channel = mask
    task_feats = 4
    emb = 32
    heads = 4
    ff_hidden_mult = 2
    n_actions = 6


# ------------------------------ helpers ------------------------------------
def _ru8(n):
    return (n + 7) // 8 * 8


def _ru16(n):
    return (n + 15) // 16 * 16


def _layer_norm(x, g, b, eps=1e-5):
    mu = jnp.mean(x, axis=-1, keepdims=True)
    xc = x - mu
    var = jnp.mean(xc * xc, axis=-1, keepdims=True)
    return xc * jax.lax.rsqrt(var + eps) * g + b


def _layout(cfg):
    """Static layout of the packed bf16 weight slab / f32 bias slab."""
    Fd = cfg.obs_entity_feats - 1
    Td = cfg.task_feats
    F_in = cfg.n_entities * (Fd + 1) + Td
    emb = cfg.emb
    ffh = cfg.ff_hidden_mult * emb
    na = cfg.n_actions
    r1 = 0                       # W1   (F_in, 2*emb) : [wfe | wt1]          (stage-1 fusion)
    r2 = r1 + _ru16(F_in)        # W2   (2*emb, emb)  : [[I], [wt2@Wv@Wo]]   (emb0 add fused)
    r3 = r2 + _ru16(2 * emb)     # Wff1 (emb, ffh)
    r4 = r3 + _ru16(emb)         # Wff2 (ffh, emb)
    r5 = r4 + _ru16(ffh)         # Wout (emb, emb+na) : [I | wqh]            (head fusion)
    rt = r5 + _ru16(emb)
    lw = max(2 * emb, ffh, emb + na)      # 64 for the default config
    return dict(Fd=Fd, Td=Td, F_in=F_in, emb=emb, ffh=ffh, na=na,
                r1=r1, r2=r2, r3=r3, r4=r4, r5=r5, rt=rt, lw=lw)


def pack_weights(params, cfg):
    """Fold the degenerate attention (softmax over one key == 1) and pack all matmul weights into
    one bf16 slab + all bias/LayerNorm vectors into one small f32 slab.  Call ONCE, reuse."""
    (wfe, bfe, wt1, bt1, wt2, bt2, wq, wk, wv, wo,
     g1, be1, wff1, bff1, wff2, bff2, g2, be2, wqh, bqh) = params
    del wq, wk  # softmax over a single task key == 1 -> Q/K have no effect on the output
    L = _layout(cfg)
    Fd, Td, F_in = L["Fd"], L["Td"], L["F_in"]
    emb, ffh, na = L["emb"], L["ffh"], L["na"]

    hp = jax.lax.Precision.HIGHEST
    wvo = jnp.dot(wv, wo, precision=hp)                # attn = task_emb @ (Wv @ Wo)
    wt2a = jnp.dot(wt2, wvo, precision=hp)             # fold into task-encoder layer 2
    b_y = (bfe + jnp.dot(bt2, wvo, precision=hp)).reshape(-1)   # combined bias on (emb0 + attn)

    eye = jnp.eye(emb, dtype=jnp.float32)
    wslab = jnp.zeros((L["rt"], L["lw"]), jnp.float32)
    # stage 1 (fused): x(39) @ W1 -> [emb0 | task L1 pre-act]
    wslab = wslab.at[L["r1"]:L["r1"] + Fd, 0:emb].set(wfe)
    wslab = wslab.at[L["r1"] + F_in - Td:L["r1"] + F_in, emb:2 * emb].set(wt1)
    # stage 2 (fused): [emb0 | relu(t1)] @ [[I],[wt2a]]
    wslab = wslab.at[L["r2"]:L["r2"] + emb, 0:emb].set(eye)
    wslab = wslab.at[L["r2"] + emb:L["r2"] + 2 * emb, 0:emb].set(wt2a)
    # FFN
    wslab = wslab.at[L["r3"]:L["r3"] + emb, 0:ffh].set(wff1)
    wslab = wslab.at[L["r4"]:L["r4"] + ffh, 0:emb].set(wff2)
    # head (fused): z @ [I | wqh] -> [h | q]
    wslab = wslab.at[L["r5"]:L["r5"] + emb, 0:emb].set(eye)
    wslab = wslab.at[L["r5"]:L["r5"] + emb, emb:emb + na].set(wqh)
    wslab = wslab.astype(jnp.bfloat16)                 # bf16 MXU operands

    bslab = jnp.zeros((16, L["lw"]), jnp.float32)      # f32: bias/LN math stays on the VPU in f32
    bslab = bslab.at[0, emb:2 * emb].set(bt1.reshape(-1))     # [0 | bt1]
    bslab = bslab.at[1, 0:emb].set(b_y)                       # bfe + bt2 @ Wv @ Wo
    bslab = bslab.at[2, 0:emb].set(g1.reshape(-1))
    bslab = bslab.at[3, 0:emb].set(be1.reshape(-1))
    bslab = bslab.at[4, 0:ffh].set(bff1.reshape(-1))
    bslab = bslab.at[5, 0:emb].set(bff2.reshape(-1))
    bslab = bslab.at[6, 0:emb].set(g2.reshape(-1))
    bslab = bslab.at[7, 0:emb].set(be2.reshape(-1))
    bslab = bslab.at[8, emb:emb + na].set(bqh.reshape(-1))    # [0 | bqh]
    return wslab, bslab


# ------------------------------ kernel --------------------------------------
def agent_kernel(x_ref, w_ref, b_ref, o_ref, *, L):
    f32, bf16 = jnp.float32, jnp.bfloat16
    Fd, F_in = L["Fd"], L["F_in"]
    emb, ffh, na = L["emb"], L["ffh"], L["na"]

    x = x_ref[...]                                   # (TB, F_in) f32 — one contiguous input slab
    w = w_ref[...]                                   # (rt, lw)   bf16 weight slab (resident)
    bias = b_ref[...]                                # (16, lw)   f32  bias/LN slab (resident)

    m0 = x[:, Fd:Fd + 1]                             # entity-0 mask channel (f32)

    def mm(a, wm):
        # bf16 MXU operands (single pass — pass count pinned by operand dtype), f32 accumulate.
        return jnp.dot(a.astype(bf16), wm, preferred_element_type=f32)

    w1 = w[L["r1"]:L["r1"] + F_in, 0:2 * emb]
    w2 = w[L["r2"]:L["r2"] + 2 * emb, 0:emb]
    wff1 = w[L["r3"]:L["r3"] + emb, 0:ffh]
    wff2 = w[L["r4"]:L["r4"] + ffh, 0:emb]
    wout = w[L["r5"]:L["r5"] + emb, 0:emb + na]

    b1 = bias[0:1, 0:2 * emb]                        # [0 | bt1]
    b_y = bias[1:2, 0:emb]                           # bfe + bt2 @ Wv @ Wo (fused)
    g1 = bias[2:3, 0:emb]
    be1 = bias[3:4, 0:emb]
    bff1 = bias[4:5, 0:ffh]
    bff2 = bias[5:6, 0:emb]
    g2 = bias[6:7, 0:emb]
    be2 = bias[7:8, 0:emb]
    bout = bias[8:9, 0:emb + na]                     # [0 | bqh]

    # Stage 1 (fused): x @ [wfe | wt1] -> [entity-0 embedding | task-encoder L1 pre-activation].
    y1 = mm(x, w1) + b1
    lane = jax.lax.broadcasted_iota(jnp.int32, y1.shape, 1)
    y1 = jnp.where(lane >= emb, jnp.maximum(y1, 0.0), y1)   # ReLU on the task half only (VPU)

    # Stage 2 (fused): [emb0 | relu(t1)] @ [[I],[wt2@Wv@Wo]] (softmax over single key == 1).
    pre = mm(y1, w2) + b_y

    # Residual + LayerNorm, FFN, residual + LayerNorm, entity mask (entity-0 row only) — all f32.
    y = _layer_norm(pre, g1, be1)
    ff = jnp.maximum(mm(y, wff1) + bff1, 0.0)
    ff = mm(ff, wff2) + bff2
    z = _layer_norm(y + ff, g2, be2) * m0            # (TB, emb) masked hidden state

    # Head (fused): z @ [I | wqh] + [0 | bqh] -> [h | q], one lane-dense store, no pad lanes.
    o_ref[...] = mm(z, wout) + bout


# ------------------------------ wrapper --------------------------------------
@partial(jax.jit, static_argnums=(3,))
def transformer_agent_forward(inputs, hidden_state, packed, cfg):
    del hidden_state  # TODO(synk): reference forward reshapes hidden_state but never uses it.
    wslab, bslab = packed
    L = _layout(cfg)
    b, a, F_in = inputs.shape
    assert F_in == L["F_in"]
    B = b * a
    emb, na = L["emb"], L["na"]
    out_w = emb + na                                  # 38 lanes: [h | q], no zero padding

    x = inputs.reshape(B, F_in).astype(jnp.float32)

    # Batch tile: many samples per grid step (sample dim -> sublanes / MXU M dimension).
    tb_max = 1024
    grid = pl.cdiv(B, tb_max)
    if grid == 1 and B >= 16:
        grid = 2          # v7x: give the "parallel" axis >= 2 steps so both TensorCores get work
    TB = _ru8(pl.cdiv(B, grid))
    Bp = grid * TB
    if Bp != B:
        x = jnp.pad(x, ((0, Bp - B), (0, 0)))

    out = pl.pallas_call(
        partial(agent_kernel, L=L),
        out_shape=jax.ShapeDtypeStruct((Bp, out_w), jnp.float32),
        grid=(grid,),
        in_specs=[
            pl.BlockSpec((TB, F_in), lambda i: (i, 0)),        # contiguous input slab tile
            pl.BlockSpec(wslab.shape, lambda i: (0, 0)),       # bf16 weight slab, resident
            pl.BlockSpec(bslab.shape, lambda i: (0, 0)),       # f32 bias/LN slab, resident
        ],
        out_specs=pl.BlockSpec((TB, out_w), lambda i: (i, 0)),  # lane-dense [h | q] output
        compiler_params=pltpu.CompilerParams(
            dimension_semantics=("parallel",),
            vmem_limit_bytes=32 * 1024 * 1024),
    )(x, wslab, bslab)

    h = out[:B, :emb]
    q = out[:B, emb:emb + na]
    return q.reshape(b, a, na), h.reshape(b, a, emb)


# ------------------------- deterministic params ------------------------------
def make_params(key, cfg):
    Fd = cfg.obs_entity_feats - 1
    emb = cfg.emb
    ffh = cfg.ff_hidden_mult * emb
    ks = jax.random.split(key, 16)

    def lin(k, fan_in, shape):
        bound = 1.0 / math.sqrt(fan_in)
        return jax.random.uniform(k, shape, jnp.float32, -bound, bound)

    return [
        lin(ks[0], Fd, (Fd, emb)), lin(ks[1], Fd, (1, emb)),                              # feat_embedding
        lin(ks[2], cfg.task_feats, (cfg.task_feats, emb)), lin(ks[3], cfg.task_feats, (1, emb)),  # task enc L1
        lin(ks[4], emb, (emb, emb)), lin(ks[5], emb, (1, emb)),                           # task enc L2
        lin(ks[6], emb, (emb, emb)),                                                      # Wq
        lin(ks[7], emb, (emb, emb)),                                                      # Wk
        lin(ks[8], emb, (emb, emb)),                                                      # Wv
        lin(ks[9], emb, (emb, emb)),                                                      # Wo
        jnp.ones((1, emb), jnp.float32), jnp.zeros((1, emb), jnp.float32),                # LayerNorm 1
        lin(ks[10], emb, (emb, ffh)), lin(ks[11], emb, (1, ffh)),                         # FF layer 1
        lin(ks[12], ffh, (ffh, emb)), lin(ks[13], ffh, (1, emb)),                         # FF layer 2
        jnp.ones((1, emb), jnp.float32), jnp.zeros((1, emb), jnp.float32),                # LayerNorm 2
        lin(ks[14], emb, (emb, cfg.n_actions)), lin(ks[15], emb, (1, cfg.n_actions)),     # q_basic
    ]


# --------------------------- pure-JAX references ------------------------------
def reference_forward(inputs, params, cfg):
    """Full, un-simplified f32 computation (all entities, per-head loop, explicit softmax)."""
    (wfe, bfe, wt1, bt1, wt2, bt2, wq, wk, wv, wo,
     g1, be1, wff1, bff1, wff2, bff2, g2, be2, wqh, bqh) = params
    b, a, _ = inputs.shape
    B = b * a
    E, Fd, Td = cfg.n_entities, cfg.obs_entity_feats - 1, cfg.task_feats
    hp = jax.lax.Precision.HIGHEST
    mm = lambda x, w: jnp.matmul(x, w, precision=hp)
    task = inputs[:, :, -Td:].reshape(B, 1, Td)
    ents = inputs[:, :, :-Td].reshape(B, E, Fd + 1)
    mask, feats = ents[:, :, -1:], ents[:, :, :-1]

    embs = mm(feats, wfe) + bfe
    te = mm(jnp.maximum(mm(task, wt1) + bt1, 0.0), wt2) + bt2
    qp, kp, vp = mm(embs, wq), mm(te, wk), mm(te, wv)
    hd = cfg.emb // cfg.heads
    outs = []
    for hh in range(cfg.heads):
        sl = slice(hh * hd, (hh + 1) * hd)
        s = jnp.sum(qp[..., sl] * kp[..., sl], -1, keepdims=True) / math.sqrt(hd)
        outs.append(jax.nn.softmax(s, -1) * vp[..., sl])
    attn = mm(jnp.concatenate(outs, -1), wo)

    y = _layer_norm(embs + attn, g1, be1)
    ff = mm(jnp.maximum(mm(y, wff1) + bff1, 0.0), wff2) + bff2
    z = _layer_norm(y + ff, g2, be2) * mask
    h = z[:, 0:1, :]
    q = mm(h, wqh) + bqh
    return q.reshape(b, a, -1), h.reshape(b, a, -1)


def reference_forward_bf16(inputs, params, cfg):
    """Mirrors the kernel's algebra and its bf16-MXU-operand rounding (f32 accumulation)."""
    (wfe, bfe, wt1, bt1, wt2, bt2, wq, wk, wv, wo,
     g1, be1, wff1, bff1, wff2, bff2, g2, be2, wqh, bqh) = params
    del wq, wk
    b, a, _ = inputs.shape
    B = b * a
    Fd, Td = cfg.obs_entity_feats - 1, cfg.task_feats
    hp = jax.lax.Precision.HIGHEST
    wvo = jnp.dot(wv, wo, precision=hp)
    wt2a = jnp.dot(wt2, wvo, precision=hp)
    b_y = bfe + jnp.dot(bt2, wvo, precision=hp)

    bf16, f32 = jnp.bfloat16, jnp.float32
    mm = lambda x, w: jnp.dot(x.astype(bf16), w.astype(bf16), preferred_element_type=f32)

    x = inputs.reshape(B, -1).astype(f32)
    x0, m0, tk = x[:, :Fd], x[:, Fd:Fd + 1], x[:, -Td:]
    emb0 = mm(x0, wfe)
    t1 = jnp.maximum(mm(tk, wt1) + bt1, 0.0)
    pre = emb0.astype(bf16).astype(f32) + mm(t1, wt2a) + b_y
    y = _layer_norm(pre, g1, be1)
    ff = jnp.maximum(mm(y, wff1) + bff1, 0.0)
    ff = mm(ff, wff2) + bff2
    z = _layer_norm(y + ff, g2, be2) * m0
    h = z.astype(bf16).astype(f32)                 # kernel emits h through the bf16 [I | wqh] matmul
    q = mm(z, wqh) + bqh
    return q.reshape(b, a, -1), h.reshape(b, a, -1)


# --------------------------------- main ---------------------------------------
if __name__ == "__main__":
    cfg = Cfg()
    E, Fd, Td = cfg.n_entities, cfg.obs_entity_feats - 1, cfg.task_feats

    key = jax.random.PRNGKey(0)
    kp, kin = jax.random.split(key)
    params = make_params(kp, cfg)
    packed = pack_weights(params, cfg)      # hoisted: built once, reused across forward calls

    def build_inputs(k, b):
        kf, km, kt = jax.random.split(k, 3)
        feats = jax.random.normal(kf, (b, cfg.n_agents, E, Fd), jnp.float32)
        maskc = (jax.random.uniform(km, (b, cfg.n_agents, E, 1)) > 0.25).astype(jnp.float32)
        ent = jnp.concatenate([feats, maskc], -1).reshape(b, cfg.n_agents, E * (Fd + 1))
        task = jax.random.normal(kt, (b, cfg.n_agents, Td), jnp.float32)
        return jnp.concatenate([ent, task], -1)

    # b=2 exercises the tiny single-tile path; b=64 exercises the multi-step parallel grid.
    for bsz in (2, 64):
        inputs = build_inputs(jax.random.fold_in(kin, bsz), bsz)      # (bsz, 3, 39)
        hidden_state = jnp.zeros((bsz, cfg.n_agents, cfg.emb), jnp.float32)

        q, h = transformer_agent_forward(inputs, hidden_state, packed, cfg)
        jax.block_until_ready((q, h))

        assert q.shape == (bsz, cfg.n_agents, cfg.n_actions)
        assert h.shape == (bsz, cfg.n_agents, cfg.emb)

        # Tight check vs a reference that mirrors the kernel's bf16-MXU math exactly.
        q_bf, h_bf = reference_forward_bf16(inputs, params, cfg)
        assert jnp.allclose(q, q_bf, atol=2e-3, rtol=2e-3)
        assert jnp.allclose(h, h_bf, atol=2e-3, rtol=2e-3)

        # Looser check vs the full un-simplified f32 reference (bf16 MXU operand rounding).
        q_fp, h_fp = reference_forward(inputs, params, cfg)
        assert jnp.allclose(q, q_fp, atol=5e-2, rtol=5e-2)
        assert jnp.allclose(h, h_fp, atol=5e-2, rtol=5e-2)

    print("KERNEL_OK")
</pallas_src>

<mosaic_0001>
module attributes {stable_mosaic.version = 11 : i64} {
  func.func @agent_kernel(%arg0: i32, %arg1: memref<8x39xf32, #tpu.memory_space<vmem>>, %arg2: memref<240x64xbf16, #tpu.memory_space<vmem>>, %arg3: memref<16x64xf32, #tpu.memory_space<vmem>>, %arg4: memref<8x38xf32, #tpu.memory_space<vmem>>) attributes {dimension_semantics = [#tpu.dimension_semantics<parallel>], iteration_bounds = array<i64: 1>, scalar_prefetch = 0 : i64, scratch_operands = 0 : i64, tpu.core_type = #tpu.core_type<tc>, window_params = [{transform_indices = @transform_0, window_bounds = array<i64: 8, 39>}, {pipeline_mode = #tpu.pipeline_mode<synchronous>, transform_indices = @transform_1, window_bounds = array<i64: 240, 64>}, {pipeline_mode = #tpu.pipeline_mode<synchronous>, transform_indices = @transform_2, window_bounds = array<i64: 16, 64>}, {transform_indices = @transform_3, window_bounds = array<i64: 8, 38>}]} {
    %c0 = arith.constant 0 : index
    %c0_0 = arith.constant 0 : index
    %0 = vector.load %arg1[%c0, %c0_0] : memref<8x39xf32, #tpu.memory_space<vmem>>, vector<8x39xf32>
    %c0_1 = arith.constant 0 : index
    %c0_2 = arith.constant 0 : index
    %1 = vector.load %arg2[%c0_1, %c0_2] : memref<240x64xbf16, #tpu.memory_space<vmem>>, vector<240x64xbf16>
    %c0_3 = arith.constant 0 : index
    %c0_4 = arith.constant 0 : index
    %2 = vector.load %arg3[%c0_3, %c0_4] : memref<16x64xf32, #tpu.memory_space<vmem>>, vector<16x64xf32>
    %3 = vector.extract_strided_slice %0 {offsets = [0, 6], sizes = [8, 1], strides = [1, 1]} : vector<8x39xf32> to vector<8x1xf32>
    %4 = vector.extract_strided_slice %1 {offsets = [0, 0], sizes = [39, 64], strides = [1, 1]} : vector<240x64xbf16> to vector<39x64xbf16>
    %5 = vector.extract_strided_slice %1 {offsets = [48, 0], sizes = [64, 32], strides = [1, 1]} : vector<240x64xbf16> to vector<64x32xbf16>
    %6 = vector.extract_strided_slice %1 {offsets = [112, 0], sizes = [32, 64], strides = [1, 1]} : vector<240x64xbf16> to vector<32x64xbf16>
    %7 = vector.extract_strided_slice %1 {offsets = [144, 0], sizes = [64, 32], strides = [1, 1]} : vector<240x64xbf16> to vector<64x32xbf16>
    %8 = vector.extract_strided_slice %1 {offsets = [208, 0], sizes = [32, 38], strides = [1, 1]} : vector<240x64xbf16> to vector<32x38xbf16>
    %9 = vector.extract_strided_slice %2 {offsets = [0, 0], sizes = [1, 64], strides = [1, 1]} : vector<16x64xf32> to vector<1x64xf32>
    %10 = vector.extract_strided_slice %2 {offsets = [1, 0], sizes = [1, 32], strides = [1, 1]} : vector<16x64xf32> to vector<1x32xf32>
    %11 = vector.extract_strided_slice %2 {offsets = [2, 0], sizes = [1, 32], strides = [1, 1]} : vector<16x64xf32> to vector<1x32xf32>
    %12 = vector.extract_strided_slice %2 {offsets = [3, 0], sizes = [1, 32], strides = [1, 1]} : vector<16x64xf32> to vector<1x32xf32>
    %13 = vector.extract_strided_slice %2 {offsets = [4, 0], sizes = [1, 64], strides = [1, 1]} : vector<16x64xf32> to vector<1x64xf32>
    %14 = vector.extract_strided_slice %2 {offsets = [5, 0], sizes = [1, 32], strides = [1, 1]} : vector<16x64xf32> to vector<1x32xf32>
    %15 = vector.extract_strided_slice %2 {offsets = [6, 0], sizes = [1, 32], strides = [1, 1]} : vector<16x64xf32> to vector<1x32xf32>
    %16 = vector.extract_strided_slice %2 {offsets = [7, 0], sizes = [1, 32], strides = [1, 1]} : vector<16x64xf32> to vector<1x32xf32>
    %17 = vector.extract_strided_slice %2 {offsets = [8, 0], sizes = [1, 38], strides = [1, 1]} : vector<16x64xf32> to vector<1x38xf32>
    %18 = arith.truncf %0 : vector<8x39xf32> to vector<8x39xbf16>
    %cst = arith.constant dense<0.000000e+00> : vector<8x64xf32>
    %19 = tpu.matmul %18, %4, %cst {dimension_numbers = #tpu.dot_dimension_numbers<[1], [0], [0], [1], [0, 0, 1, 1], [], []>} : vector<8x39xbf16>, vector<39x64xbf16>, vector<8x64xf32> -> vector<8x64xf32>
    %20 = vector.broadcast %9 : vector<1x64xf32> to vector<8x64xf32>
    %21 = arith.addf %19, %20 : vector<8x64xf32>
    %22 = tpu.iota {dimensions = array<i32: 1>} : vector<8x64xi32>
    %c32_i32 = arith.constant 32 : i32
    %23 = vector.broadcast %c32_i32 : i32 to vector<8x64xi32>
    %24 = arith.cmpi sge, %22, %23 : vector<8x64xi32>
    %cst_5 = arith.constant 0.000000e+00 : f32
    %25 = vector.broadcast %cst_5 : f32 to vector<8x64xf32>
    %26 = arith.maximumf %21, %25 : vector<8x64xf32>
    %27 = arith.select %24, %26, %21 : vector<8x64xi1>, vector<8x64xf32>
    %28 = arith.truncf %27 : vector<8x64xf32> to vector<8x64xbf16>
    %cst_6 = arith.constant dense<0.000000e+00> : vector<8x32xf32>
    %29 = tpu.matmul %28, %5, %cst_6 {dimension_numbers = #tpu.dot_dimension_numbers<[1], [0], [0], [1], [0, 0, 1, 1], [], []>} : vector<8x64xbf16>, vector<64x32xbf16>, vector<8x32xf32> -> vector<8x32xf32>
    %30 = vector.broadcast %10 : vector<1x32xf32> to vector<8x32xf32>
    %31 = arith.addf %29, %30 : vector<8x32xf32>
    %cst_7 = arith.constant dense<0.000000e+00> : vector<8xf32>
    %32 = vector.multi_reduction <add>, %31, %cst_7 [1] : vector<8x32xf32> to vector<8xf32>
    %33 = vector.shape_cast %32 : vector<8xf32> to vector<8x1xf32>
    %cst_8 = arith.constant 3.200000e+01 : f32
    %34 = vector.broadcast %cst_8 : f32 to vector<8x1xf32>
    %35 = arith.divf %33, %34 : vector<8x1xf32>
    %36 = vector.broadcast %35 : vector<8x1xf32> to vector<8x32xf32>
    %37 = arith.subf %31, %36 : vector<8x32xf32>
    %38 = arith.mulf %37, %37 : vector<8x32xf32>
    %cst_9 = arith.constant dense<0.000000e+00> : vector<8xf32>
    %39 = vector.multi_reduction <add>, %38, %cst_9 [1] : vector<8x32xf32> to vector<8xf32>
    %40 = vector.shape_cast %39 : vector<8xf32> to vector<8x1xf32>
    %cst_10 = arith.constant 3.200000e+01 : f32
    %41 = vector.broadcast %cst_10 : f32 to vector<8x1xf32>
    %42 = arith.divf %40, %41 : vector<8x1xf32>
    %cst_11 = arith.constant 9.99999974E-6 : f32
    %43 = vector.broadcast %cst_11 : f32 to vector<8x1xf32>
    %44 = arith.addf %42, %43 : vector<8x1xf32>
    %45 = math.rsqrt %44 : vector<8x1xf32>
    %46 = vector.broadcast %45 : vector<8x1xf32> to vector<8x32xf32>
    %47 = arith.mulf %37, %46 : vector<8x32xf32>
    %48 = vector.broadcast %11 : vector<1x32xf32> to vector<8x32xf32>
    %49 = arith.mulf %47, %48 : vector<8x32xf32>
    %50 = vector.broadcast %12 : vector<1x32xf32> to vector<8x32xf32>
    %51 = arith.addf %49, %50 : vector<8x32xf32>
    %52 = arith.truncf %51 : vector<8x32xf32> to vector<8x32xbf16>
    %cst_12 = arith.constant dense<0.000000e+00> : vector<8x64xf32>
    %53 = tpu.matmul %52, %6, %cst_12 {dimension_numbers = #tpu.dot_dimension_numbers<[1], [0], [0], [1], [0, 0, 1, 1], [], []>} : vector<8x32xbf16>, vector<32x64xbf16>, vector<8x64xf32> -> vector<8x64xf32>
    %54 = vector.broadcast %13 : vector<1x64xf32> to vector<8x64xf32>
    %55 = arith.addf %53, %54 : vector<8x64xf32>
    %cst_13 = arith.constant 0.000000e+00 : f32
    %56 = vector.broadcast %cst_13 : f32 to vector<8x64xf32>
    %57 = arith.maximumf %55, %56 : vector<8x64xf32>
    %58 = arith.truncf %57 : vector<8x64xf32> to vector<8x64xbf16>
    %cst_14 = arith.constant dense<0.000000e+00> : vector<8x32xf32>
    %59 = tpu.matmul %58, %7, %cst_14 {dimension_numbers = #tpu.dot_dimension_numbers<[1], [0], [0], [1], [0, 0, 1, 1], [], []>} : vector<8x64xbf16>, vector<64x32xbf16>, vector<8x32xf32> -> vector<8x32xf32>
    %60 = vector.broadcast %14 : vector<1x32xf32> to vector<8x32xf32>
    %61 = arith.addf %59, %60 : vector<8x32xf32>
    %62 = arith.addf %51, %61 : vector<8x32xf32>
    %cst_15 = arith.constant dense<0.000000e+00> : vector<8xf32>
    %63 = vector.multi_reduction <add>, %62, %cst_15 [1] : vector<8x32xf32> to vector<8xf32>
    %64 = vector.shape_cast %63 : vector<8xf32> to vector<8x1xf32>
    %cst_16 = arith.constant 3.200000e+01 : f32
    %65 = vector.broadcast %cst_16 : f32 to vector<8x1xf32>
    %66 = arith.divf %64, %65 : vector<8x1xf32>
    %67 = vector.broadcast %66 : vector<8x1xf32> to vector<8x32xf32>
    %68 = arith.subf %62, %67 : vector<8x32xf32>
    %69 = arith.mulf %68, %68 : vector<8x32xf32>
    %cst_17 = arith.constant dense<0.000000e+00> : vector<8xf32>
    %70 = vector.multi_reduction <add>, %69, %cst_17 [1] : vector<8x32xf32> to vector<8xf32>
    %71 = vector.shape_cast %70 : vector<8xf32> to vector<8x1xf32>
    %cst_18 = arith.constant 3.200000e+01 : f32
    %72 = vector.broadcast %cst_18 : f32 to vector<8x1xf32>
    %73 = arith.divf %71, %72 : vector<8x1xf32>
    %cst_19 = arith.constant 9.99999974E-6 : f32
    %74 = vector.broadcast %cst_19 : f32 to vector<8x1xf32>
    %75 = arith.addf %73, %74 : vector<8x1xf32>
    %76 = math.rsqrt %75 : vector<8x1xf32>
    %77 = vector.broadcast %76 : vector<8x1xf32> to vector<8x32xf32>
    %78 = arith.mulf %68, %77 : vector<8x32xf32>
    %79 = vector.broadcast %15 : vector<1x32xf32> to vector<8x32xf32>
    %80 = arith.mulf %78, %79 : vector<8x32xf32>
    %81 = vector.broadcast %16 : vector<1x32xf32> to vector<8x32xf32>
    %82 = arith.addf %80, %81 : vector<8x32xf32>
    %83 = vector.broadcast %3 : vector<8x1xf32> to vector<8x32xf32>
    %84 = arith.mulf %82, %83 : vector<8x32xf32>
    %85 = arith.truncf %84 : vector<8x32xf32> to vector<8x32xbf16>
    %cst_20 = arith.constant dense<0.000000e+00> : vector<8x38xf32>
    %86 = tpu.matmul %85, %8, %cst_20 {dimension_numbers = #tpu.dot_dimension_numbers<[1], [0], [0], [1], [0, 0, 1, 1], [], []>} : vector<8x32xbf16>, vector<32x38xbf16>, vector<8x38xf32> -> vector<8x38xf32>
    %87 = vector.broadcast %17 : vector<1x38xf32> to vector<8x38xf32>
    %88 = arith.addf %86, %87 : vector<8x38xf32>
    %c0_21 = arith.constant 0 : index
    %c0_22 = arith.constant 0 : index
    %89 = vector.load %arg4[%c0_21, %c0_22] : memref<8x38xf32, #tpu.memory_space<vmem>>, vector<8x38xf32>
    tpu.vector_store %arg4[%c0_21, %c0_22], %88 {strides = array<i32>} : memref<8x38xf32, #tpu.memory_space<vmem>>, vector<8x38xf32>,
    return
  }
  func.func @transform_0(%arg0: i32) -> (i32, i32) {
    %c0_i32 = arith.constant 0 : i32
    %c0_i32_0 = arith.constant 0 : i32
    return %arg0, %c0_i32 : i32, i32
  }
  func.func @transform_1(%arg0: i32) -> (i32, i32) {
    %c0_i32 = arith.constant 0 : i32
    %c0_i32_0 = arith.constant 0 : i32
    %c0_i32_1 = arith.constant 0 : i32
    return %c0_i32, %c0_i32_0 : i32, i32
  }
  func.func @transform_2(%arg0: i32) -> (i32, i32) {
    %c0_i32 = arith.constant 0 : i32
    %c0_i32_0 = arith.constant 0 : i32
    %c0_i32_1 = arith.constant 0 : i32
    return %c0_i32, %c0_i32_0 : i32, i32
  }
  func.func @transform_3(%arg0: i32) -> (i32, i32) {
    %c0_i32 = arith.constant 0 : i32
    %c0_i32_0 = arith.constant 0 : i32
    return %arg0, %c0_i32 : i32, i32
  }
}

</mosaic_0001>

<bundles_post_ra>
// kernel: transformer_agent_forward.1
= control target key start
LH: loop header
LB: loop body
LE: loop exit
PB: predicated region body
PF: predicated region fallthrough
CT: control target
= control target key end

     0   :  { %vm71_vm0 = vcmask 1042432   ;;  %vm72_vm1 = vcmask 1043456   ;;  %v564_v0 = vmov 0.0   ;;  %v565_v2 = vmov 65535   ;;  %s707_s1 = inlined_call_operand.vmem [shape: bf16[240,64], index: 1, kind: input, shape index: {}]   ;;  %s708_s0 = inlined_call_operand.vmem [shape: f32[8,39], index: 0, kind: input, shape index: {}]   ;;  %s709_s2 = inlined_call_operand.vmem [shape: f32[16,64], index: 2, kind: input, shape index: {}]   ;;  %s710_s3 = inlined_call_operand.vmem [shape: f32[8,38], index: 3, kind: output, shape index: {}]  }
   0x1   :  { %490 = vmatprep.subr.bf16.mxu0 %v564_v0  ;;  %v545_v1 = vld [vmem:[%s707_s1] sm:$0xff]   ;;  %v73_v3 = vsel %vm71_vm0, 4294967295, %v565_v2  ;;  %500 = vmatprep.subr.bf16.mxu1 %v564_v0  ;;  %v546_v4 = vld [vmem:[%s707_s1 + $0x8] sm:$0xff]   ;;  %v547_v5 = vld [vmem:[%s707_s1 + $0x10] ss:$0 sps:$4 sm:$0xff]   ;;  %vm566_vm2 = vmmov 0   ;;  %v48_v14 = vlaneseq }
   0x2   :  { %491 = vmatpush3.bf16.msra.mxu0 %v545_v1  ;;  %v74_v6 = vsel %vm72_vm1, %v73_v3, 0  ;;  %496 = vmatprep.mubr.msk.bf16.mxu0 %vm566_vm2, %v564_v0  ;;  %v548_v7 = vld [vmem:[%s707_s1 + $0x18] sm:$0xff]   ;;  %v549_v8 = vld [vmem:[%s707_s1 + $0x20] sm:$0xff]   ;;  %vm67_vm3 = vcmask 318464   ;;  %v550_v12 = vld [vmem:[%s707_s1 + $0x28] sm:$0xff]   ;;  %vm152_vm5 = vcmask 523264  }
   0x3   :  { %492 = vmatprep.subr.bf16.mxu0 %v564_v0  ;;  %508 = vmatprep.mubr.msk.bf16.mxu1 %vm566_vm2, %v564_v0  ;;  %v76_v9 = vand.u32 %v547_v5, %v74_v6  ;;  %v613_v10 = vld [vmem:[%s708_s0] sm:$0xff]  ;;  %v551_v13 = vld [vmem:[%s707_s1 + $0x30] sm:$0xff]   ;;  %v631_v15 = vshrl.u32 %v48_v14, 7  ;;  %v119_v19 = vand.u32 127, %v48_v14  ;;  %vm196_vm6 = vcmask 261120   ;;  %v552_v41 = vld [vmem:[%s707_s1 + $0x38] sm:$0xff]  }
   0x4   :  { %501 = vmatpush3.bf16.msra.mxu1 %v548_v7  ;;  %v47_v11 = vpack.c.bf16 %v613_v10, %v613_v10  ;;  %v637_v17 = vld [vmem:[%s709_s2] sm:$0xff]  ;;  %v554_v43 = vld [vmem:[%s707_s1 + $0x48] sm:$0xff]   ;;  %v555_v44 = vld [vmem:[%s707_s1 + $0x50] sm:$0xff]   ;;  %vm444_vm7 = vcmask 310272  }
   0x5   :  { %502 = vmatprep.subr.bf16.mxu1 %v564_v0  ;;  %v50_v16 = vsub.s32 0, %v631_v15  ;;  %vm120_vm4 = vcmp.ge.s32.totalorder %v119_v19, 32  ;;  %v126_v28 = vsub.s32 1, %v631_v15  ;;  %v553_v42 = vld [vmem:[%s707_s1 + $0x40] sm:$0xff]   ;;  %v213_v48 = vsub.s32 2, %v631_v15  ;;  %v556_v57 = vld [vmem:[%s707_s1 + $0x58] sm:$0xff]  }
   0x6   :  { %493 = vmatpush3.bf16.msra.mxu0 %v546_v4  ;;  %v218_v49 = vsub.s32 3, %v631_v15  ;;  %v557_v58 = vld [vmem:[%s707_s1 + $0x60] sm:$0xff]   ;;  %v224_v59 = vsub.s32 4, %v631_v15  ;;  %v285_v5 = vsub.s32 5, %v631_v15 }
   0x7   :  { %494 = vmatprep.subr.bf16.mxu0 %v564_v0  ;;  %v51_v18 = vrot.slane %v637_v17, %v50_v16  ;;  %v127_v29 = vrot.slane %v637_v17, %v126_v28  ;;  %v214_v50 = vrot.slane %v637_v17, %v213_v48  ;;  %v370_v28 = vsub.s32 6, %v631_v15 }
   0x8   :  { %503 = vmatpush3.bf16.msra.mxu1 %v549_v8  ;;  %v219_v53 = vrot.slane %v637_v17, %v218_v49  ;;  %v225_v60 = vrot.slane %v637_v17, %v224_v59  ;;  %v286_v6 = vrot.slane %v637_v17, %v285_v5 }
   0x9   :  { %504 = vmatprep.subr.bf16.mxu1 %v564_v0 }
   0xa   :  { %495 = vmatpush3.bf16.msra.mxu0 %v76_v9 }
   0xb   :  { %512 = vmatprep.subr.bf16.mxu0 %v564_v0 }
   0xc   :  { %505 = vmatpush3.bf16.msra.mxu1 %v550_v12 }
   0xd   :  { %497 = vmatmul.mubr.msk.bf16.vlgmr.msra.gmra.mrb[0].mxu0 %vm67_vm3, %v47_v11  ;;  %506 = vmatprep.subr.bf16.mxu1 %v564_v0 }
   0xe   :  { %516 = vmatprep.mubr.msk.bf16.mxu0 %vm566_vm2, %v564_v0  ;;  %513 = vmatpush3.bf16.msra.mxu0 %v552_v41 }
   0xf   :  { %514 = vmatprep.subr.bf16.mxu0 %v564_v0 }
  0x10   :  { %507 = vmatpush3.bf16.msra.mxu1 %v551_v13 }
  0x11   :  { %520 = vmatprep.subr.bf16.mxu1 %v564_v0 }
  0x12   :  { %515 = vmatpush3.bf16.msra.mxu0 %v553_v42 }
  0x13   :  { %532 = vmatprep.subr.bf16.mxu0 %v564_v0 }
  0xe0   :  { %v112_v20 = vpop.f32.mrb[0].mxu0 }
  0xe1   :  { %v113_v21 = vadd.f32 %v112_v20, %v51_v18  ;;  %v498_v22 = vpop.f32.mrb[1].mxu0  ;;  %v567_v18 = vmov 6  }
  0xe2   :  { %v115_v23 = vpop.f32.mrb[2].mxu0  ;;  %544 = vset.pattern.permute.xlu0 %v567_v18 }
  0xe3   :  { %v121_v24 = vmax.f32 %v113_v21, 0.0  ;;  %v499_v25 = vpop.f32.mrb[3].mxu0 }
  0xe4   :  { %v559_v25 = vld [vmem:[%s707_s1 + $0x70] sm:$0xff]  }
  0xe5   :  { %v122_v26 = vsel %vm120_vm4, %v121_v24, %v113_v21  ;;  %v558_v24 = vld [vmem:[%s707_s1 + $0x68] sm:$0xff]  }
  0xe6   :  { %v123_v27 = vpack.c.bf16 %v122_v26, %v122_v26 }
  0xe8   :  { %509 = vmatmul.mubr.msk.bf16.vlgmr.msra.gmra.mrb[0].mxu1 %vm152_vm5, %v123_v27 }
  0xe9   :  { %528 = vmatprep.mubr.msk.bf16.mxu1 %vm566_vm2, %v564_v0  ;;  %521 = vmatpush3.bf16.msra.mxu1 %v554_v43 }
  0xea   :  { %522 = vmatprep.subr.bf16.mxu1 %v564_v0 }
  0xed   :  { %523 = vmatpush3.bf16.msra.mxu1 %v555_v44 }
  0xee   :  { %524 = vmatprep.subr.bf16.mxu1 %v564_v0 }
  0xf1   :  { %525 = vmatpush3.bf16.msra.mxu1 %v556_v57 }
  0xf2   :  { %526 = vmatprep.subr.bf16.mxu1 %v564_v0 }
  0xf5   :  { %527 = vmatpush3.bf16.msra.mxu1 %v557_v58 }
 0x1bb   :  { %v190_v30 = vpop.f32.mrb[0].mxu1 }
 0x1bc   :  { %v191_v31 = vadd.f32 %v190_v30, %v127_v29  ;;  %v510_v32 = vpop.f32.mrb[1].mxu1  ;;  %v375_v29 = vsub.s32 7, %v631_v15  ;;  %v371_v30 = vrot.slane %v637_v17, %v370_v28 }
 0x1bd   :  { %v193_v33 = vpop.f32.mrb[2].mxu1 }
 0x1be   :  { %v511_v34 = vpop.f32.mrb[3].mxu1  ;;  %v197_v35 = vsel %vm196_vm6, %v191_v31, 0.0  ;;  %v376_v32 = vrot.slane %v637_v17, %v375_v29 }
 0x1bf   :  { %198 = vadd.xlane.f32.xlu0 %v197_v35 }
 0x24c   :  { %v199_v36 = vpop.xlane.xlu0 %198 }
 0x24d   :  { %v201_v37 = vmul.f32 0.03125, %v199_v36 }
 0x24f   :  { %v202_v38 = vsub.f32 %v191_v31, %v201_v37 }
 0x251   :  { %v203_v39 = vmul.f32 %v202_v38, %v202_v38 }
 0x253   :  { %v204_v40 = vsel %vm196_vm6, %v203_v39, 0.0 }
 0x254   :  { %205 = vadd.xlane.f32.xlu0 %v204_v40 }
 0x26a   :  { %380 = vperm.xlu0 %544, %v613_v10  }
 0x2e1   :  { %v206_v45 = vpop.xlane.xlu0 %205 }
 0x2e2   :  { %v207_v46 = vmul.f32 0.03125, %v206_v45 }
 0x2e4   :  { %v208_v47 = vadd.f32 1e-05, %v207_v46 }
 0x2e6   :  { %560 = vrsqrt.f32 %v208_v47 }
 0x2e9   :  { %v381_v34 = vpop.permute.xlu0 %380 }
 0x2f0   :  { %v561_v51 = vpop.eup %560 }
 0x2f1   :  { %v210_v52 = vmul.f32 %v561_v51, %v202_v38  ;;  %v46_v38 = vld [vmem:[%s709_s2 + $0x8] sm:$0xff] }
 0x2f2   :  { %v388_v39 = vrot.slane %v46_v38, %v50_v16 }
 0x2f3   :  { %v215_v54 = vmul.f32 %v214_v50, %v210_v52 }
 0x2f5   :  { %v220_v55 = vadd.f32 %v219_v53, %v215_v54 }
 0x2f7   :  { %v221_v56 = vpack.c.bf16 %v220_v55, %v220_v55 }
 0x2f9   :  { %517 = vmatmul.mubr.msk.bf16.vlgmr.msra.gmra.mrb[4].mxu0 %vm196_vm6, %v221_v56 }
 0x2fa   :  { %536 = vmatprep.mubr.msk.bf16.mxu0 %vm566_vm2, %v564_v0  ;;  %533 = vmatpush3.bf16.msra.mxu0 %v558_v24 }
 0x2fb   :  { %534 = vmatprep.subr.bf16.mxu0 %v564_v0 }
 0x2fe   :  { %535 = vmatpush3.bf16.msra.mxu0 %v559_v25 }
 0x3cc   :  { %v275_v61 = vpop.f32.mrb[4].mxu0 }
 0x3cd   :  { %v276_v62 = vadd.f32 %v275_v61, %v225_v60  ;;  %v518_v63 = vpop.f32.mrb[5].mxu0 }
 0x3ce   :  { %v278_v1 = vpop.f32.mrb[6].mxu0 }
 0x3cf   :  { %v281_v2 = vmax.f32 %v276_v62, 0.0  ;;  %v519_v3 = vpop.f32.mrb[7].mxu0 }
 0x3d1   :  { %v282_v4 = vpack.c.bf16 %v281_v2, %v281_v2 }
 0x3d3   :  { %529 = vmatmul.mubr.msk.bf16.vlgmr.msra.gmra.mrb[4].mxu1 %vm152_vm5, %v282_v4 }
 0x4a6   :  { %v348_v7 = vpop.f32.mrb[4].mxu1 }
 0x4a7   :  { %v349_v8 = vadd.f32 %v348_v7, %v286_v6  ;;  %v530_v9 = vpop.f32.mrb[5].mxu1 }
 0x4a8   :  { %v351_v11 = vpop.f32.mrb[6].mxu1 }
 0x4a9   :  { %v531_v12 = vpop.f32.mrb[7].mxu1  ;;  %v354_v13 = vadd.f32 %v349_v8, %v220_v55 }
 0x4ab   :  { %v355_v14 = vsel %vm196_vm6, %v354_v13, 0.0 }
 0x4ac   :  { %356 = vadd.xlane.f32.xlu1 %v355_v14 }
 0x539   :  { %v357_v19 = vpop.xlane.xlu1 %356 }
 0x53a   :  { %v358_v20 = vmul.f32 0.03125, %v357_v19 }
 0x53c   :  { %v359_v21 = vsub.f32 %v354_v13, %v358_v20 }
 0x53e   :  { %v360_v22 = vmul.f32 %v359_v21, %v359_v21 }
 0x540   :  { %v361_v23 = vsel %vm196_vm6, %v360_v22, 0.0 }
 0x541   :  { %362 = vadd.xlane.f32.xlu1 %v361_v23 }
 0x5ce   :  { %v363_v10 = vpop.xlane.xlu1 %362 }
 0x5cf   :  { %v364_v26 = vmul.f32 0.03125, %v363_v10 }
 0x5d1   :  { %v365_v27 = vadd.f32 1e-05, %v364_v26 }
 0x5d3   :  { %562 = vrsqrt.f32 %v365_v27 }
 0x5dd   :  { %v563_v31 = vpop.eup %562 }
 0x5de   :  { %v367_v33 = vmul.f32 %v563_v31, %v359_v21 }
 0x5e0   :  { %v372_v0 = vmul.f32 %v371_v30, %v367_v33 }
 0x5e2   :  { %v377_v35 = vadd.f32 %v376_v32, %v372_v0 }
 0x5e4   :  { %v383_v36 = vmul.f32 %v381_v34, %v377_v35 }
 0x5e6   :  { %v384_v37 = vpack.c.bf16 %v383_v36, %v383_v36 }
 0x5e8   :  { %537 = vmatmul.mubr.msk.bf16.vlgmr.msra.gmra.mrb[8].mxu0 %vm196_vm6, %v384_v37 }
 0x6bb   :  { %v438_v40 = vpop.f32.mrb[8].mxu0 }
 0x6bc   :  { %v439_v41 = vadd.f32 %v438_v40, %v388_v39  ;;  %v538_v42 = vpop.f32.mrb[9].mxu0 }
 0x6bd   :  { %v441_v17 = vpop.f32.mrb[10].mxu0 }
 0x6be   :  { %445 = vst.msk [vmem:[%s710_s3] sm:$0xff] %vm444_vm7, %v439_v41  ;;  %v539_v43 = vpop.f32.mrb[11].mxu0 }

</bundles_post_ra>
